<compile_context>
chip_gen: v5e
topology: v5e:2x2
jax: 0.10.0
libtpu: 0.0.40
codegen_flags: <defaults>
</compile_context>

<pallas_src>
import functools

import jax
import jax.numpy as jnp
from jax.experimental import pallas as pl
from jax.experimental.pallas import tpu as pltpu


def _round_up(v, m):
    return (v + m - 1) // m * m


def _slab_layout(nfeat, nhid, nclass):
    """Row layout of the packed parameter slab.

    Every segment starts on a sublane-aligned (multiple-of-8) row and at
    lane 0, so in-kernel static ref slices are trivially aligned.
    Returns ({name: (row_start, rows, cols)}, total_rows, total_cols).
    """
    layout = {}
    r = 0

    def add(name, rows, cols):
        nonlocal r
        layout[name] = (r, rows, cols)
        r += _round_up(rows, 8)

    add("w1", nfeat, nhid)
    add("w2", nhid, nhid)
    add("w3", nhid, nhid)
    add("wl", nhid, nclass)
    add("b1", 1, nhid)
    add("b2", 1, nhid)
    add("b3", 1, nhid)
    add("bl", 1, nclass)

    total_rows = _round_up(r, 8)
    total_cols = _round_up(max(nfeat, nhid, nclass), 128)
    return layout, total_rows, total_cols


def pack_params(params, nfeat, nhid, nclass):
    """Concatenate all weights/biases into one (8,128)-padded f32 slab.

    Built ONCE at parameter-prep time; the jitted forward then sees a single
    input array instead of 9 separately DMA'd tensors.
    """
    layout, rows, cols = _slab_layout(nfeat, nhid, nclass)
    slab = jnp.zeros((rows, cols), jnp.float32)
    for name, (r0, nr, nc) in layout.items():
        slab = slab.at[r0:r0 + nr, 0:nc].set(
            params[name].astype(jnp.float32).reshape(nr, nc))
    return slab


@functools.partial(jax.jit, static_argnames=("nfeat", "nhid", "nclass"))
def gcn_synthetic_graph_forward(x, adj, param_slab, *, nfeat, nhid, nclass):
    """x: (N, nfeat), adj: (N, N), param_slab from pack_params.

    Returns (1, nclass) log-probabilities (module eval-mode semantics).
    """
    layout, _, _ = _slab_layout(nfeat, nhid, nclass)

    def kernel(x_ref, adj_ref, slab_ref, out_ref):
        def seg(name):
            r0, nr, nc = layout[name]
            return slab_ref[r0:r0 + nr, 0:nc]   # static window -> free view

        x_v = x_ref[...]        # (N, nfeat) f32
        adj_v = adj_ref[...]    # (N, N)     f32

        # Column-mean of adj for the fused graph-mean readout (in-kernel,
        # one cross-sublane reduce on a tile that's already in VMEM).
        adj_cm = jnp.mean(adj_v, axis=0, keepdims=True)   # (1, N)

        w1, b1 = seg("w1"), seg("b1")
        w2, b2 = seg("w2"), seg("b2")
        w3, b3 = seg("w3"), seg("b3")
        wl, bl = seg("wl"), seg("bl")

        # --- gc1: relu(adj @ (x @ W1) + b1) ---
        # Associativity: pick the order that keeps the adjacency matmul's
        # output dim at min(nfeat, nhid) (static Python branch).
        if nfeat <= nhid:
            h1 = jnp.dot(jnp.dot(adj_v, x_v, preferred_element_type=jnp.float32),
                         w1, preferred_element_type=jnp.float32)
        else:
            h1 = jnp.dot(adj_v, jnp.dot(x_v, w1, preferred_element_type=jnp.float32),
                         preferred_element_type=jnp.float32)
        h1 = jnp.maximum(h1 + b1, 0.0)                       # (N, nhid)

        # --- gc2: relu(adj @ (h1 @ W2) + b2) ---
        s2 = jnp.dot(h1, w2, preferred_element_type=jnp.float32)
        h2 = jnp.maximum(jnp.dot(adj_v, s2, preferred_element_type=jnp.float32) + b2,
                         0.0)                                # (N, nhid)

        # --- gc3 + mean readout fused:
        #     mean(adj @ s3 + b3, axis=0) == mean(adj, 0) @ s3 + b3 ---
        s3 = jnp.dot(h2, w3, preferred_element_type=jnp.float32)
        h4 = jnp.dot(adj_cm, s3, preferred_element_type=jnp.float32) + b3  # (1, nhid)

        # --- linear head + log_softmax over dim=1 ---
        logits = jnp.dot(h4, wl, preferred_element_type=jnp.float32) + bl  # (1, nclass)
        m = jnp.max(logits, axis=1, keepdims=True)
        shifted = logits - m
        lse = jnp.log(jnp.sum(jnp.exp(shifted), axis=1, keepdims=True))
        out_ref[...] = shifted - lse

    vmem = pl.BlockSpec(memory_space=pltpu.MemorySpace.VMEM)
    return pl.pallas_call(
        kernel,
        out_shape=jax.ShapeDtypeStruct((1, nclass), jnp.float32),
        in_specs=[vmem, vmem, vmem],
        out_specs=vmem,
    )(x.astype(jnp.float32), adj.astype(jnp.float32), param_slab)


def init_params(key, nfeat, nhid, nclass):
    """Deterministic init mirroring GraphConvolution.reset_parameters /
    nn.Linear defaults (uniform(-stdv, stdv) with stdv = 1/sqrt(fan))."""
    ks = jax.random.split(key, 8)

    def u(k, shape, stdv):
        return jax.random.uniform(k, shape, jnp.float32, -stdv, stdv)

    s_hid = 1.0 / jnp.sqrt(jnp.float32(nhid))
    s_cls = 1.0 / jnp.sqrt(jnp.float32(nhid))  # nn.Linear: 1/sqrt(fan_in)

    return {
        "w1": u(ks[0], (nfeat, nhid), s_hid),
        "b1": u(ks[1], (1, nhid), s_hid),
        "w2": u(ks[2], (nhid, nhid), s_hid),
        "b2": u(ks[3], (1, nhid), s_hid),
        "w3": u(ks[4], (nhid, nhid), s_hid),
        "b3": u(ks[5], (1, nhid), s_hid),
        # nn.Linear weight stored pre-transposed: (nhid, nclass)
        "wl": u(ks[6], (nhid, nclass), s_cls),
        "bl": u(ks[7], (1, nclass), s_cls),
    }


def reference_forward(x, adj, p):
    """Pure-JAX f32 reference with the module's exact semantics (eval mode)."""
    h1 = jnp.maximum(adj @ (x @ p["w1"]) + p["b1"], 0.0)
    h2 = jnp.maximum(adj @ (h1 @ p["w2"]) + p["b2"], 0.0)
    h3 = adj @ (h2 @ p["w3"]) + p["b3"]
    h4 = jnp.mean(h3, axis=0, keepdims=True)
    logits = h4 @ p["wl"] + p["bl"]
    return jax.nn.log_softmax(logits, axis=1)


if __name__ == "__main__":
    key = jax.random.PRNGKey(0)
    k_x, k_adj, k_p = jax.random.split(key, 3)

    # Small synthetic graph: 16 nodes, nfeat=8, nhid=32, nclass=4
    N, nfeat, nhid, nclass = 16, 8, 32, 4

    x = jax.random.normal(k_x, (N, nfeat), jnp.float32)

    # Symmetric normalized-ish dense adjacency with self loops.
    a = (jax.random.uniform(k_adj, (N, N)) < 0.3).astype(jnp.float32)
    a = jnp.maximum(a, a.T) + jnp.eye(N, dtype=jnp.float32)
    deg = jnp.sum(a, axis=1, keepdims=True)
    adj = a / deg

    params = init_params(k_p, nfeat, nhid, nclass)
    param_slab = pack_params(params, nfeat, nhid, nclass)   # built once

    out = gcn_synthetic_graph_forward(
        x, adj, param_slab, nfeat=nfeat, nhid=nhid, nclass=nclass)
    out = jax.block_until_ready(out)

    ref = reference_forward(x, adj, params)
    assert out.shape == (1, nclass), out.shape
    # All-f32 kernel now; only matmul-reassociation rounding differs from the
    # reference, so the tolerance is tight (was 5e-2 with bf16 operands).
    assert jnp.allclose(out, ref, atol=1e-4, rtol=1e-4), (out, ref)

    print("KERNEL_OK")
</pallas_src>

<mosaic_0001>
module attributes {stable_mosaic.version = 11 : i64} {
  func.func @kernel(%arg0: memref<16x8xf32, #tpu.memory_space<vmem>>, %arg1: memref<16x16xf32, #tpu.memory_space<vmem>>, %arg2: memref<136x128xf32, #tpu.memory_space<vmem>>, %arg3: memref<1x4xf32, #tpu.memory_space<vmem>>) attributes {dimension_semantics = [], scalar_prefetch = 0 : i64, scratch_operands = 0 : i64, tpu.core_type = #tpu.core_type<tc>} {
    %c0 = arith.constant 0 : index
    %c0_0 = arith.constant 0 : index
    %0 = vector.load %arg0[%c0, %c0_0] : memref<16x8xf32, #tpu.memory_space<vmem>>, vector<16x8xf32>
    %c0_1 = arith.constant 0 : index
    %c0_2 = arith.constant 0 : index
    %1 = vector.load %arg1[%c0_1, %c0_2] : memref<16x16xf32, #tpu.memory_space<vmem>>, vector<16x16xf32>
    %cst = arith.constant dense<0.000000e+00> : vector<16xf32>
    %2 = vector.multi_reduction <add>, %1, %cst [0] : vector<16x16xf32> to vector<16xf32>
    %3 = vector.shape_cast %2 : vector<16xf32> to vector<1x16xf32>
    %cst_3 = arith.constant 1.600000e+01 : f32
    %4 = vector.broadcast %cst_3 : f32 to vector<1x16xf32>
    %5 = arith.divf %3, %4 : vector<1x16xf32>
    %c0_4 = arith.constant 0 : index
    %c0_5 = arith.constant 0 : index
    %6 = vector.load %arg2[%c0_4, %c0_5] : memref<136x128xf32, #tpu.memory_space<vmem>>, vector<8x32xf32>
    %c104 = arith.constant 104 : index
    %c0_6 = arith.constant 0 : index
    %7 = vector.load %arg2[%c104, %c0_6] : memref<136x128xf32, #tpu.memory_space<vmem>>, vector<1x32xf32>
    %c8 = arith.constant 8 : index
    %c0_7 = arith.constant 0 : index
    %8 = vector.load %arg2[%c8, %c0_7] : memref<136x128xf32, #tpu.memory_space<vmem>>, vector<32x32xf32>
    %c112 = arith.constant 112 : index
    %c0_8 = arith.constant 0 : index
    %9 = vector.load %arg2[%c112, %c0_8] : memref<136x128xf32, #tpu.memory_space<vmem>>, vector<1x32xf32>
    %c40 = arith.constant 40 : index
    %c0_9 = arith.constant 0 : index
    %10 = vector.load %arg2[%c40, %c0_9] : memref<136x128xf32, #tpu.memory_space<vmem>>, vector<32x32xf32>
    %c120 = arith.constant 120 : index
    %c0_10 = arith.constant 0 : index
    %11 = vector.load %arg2[%c120, %c0_10] : memref<136x128xf32, #tpu.memory_space<vmem>>, vector<1x32xf32>
    %c72 = arith.constant 72 : index
    %c0_11 = arith.constant 0 : index
    %12 = vector.load %arg2[%c72, %c0_11] : memref<136x128xf32, #tpu.memory_space<vmem>>, vector<32x4xf32>
    %c128 = arith.constant 128 : index
    %c0_12 = arith.constant 0 : index
    %13 = vector.load %arg2[%c128, %c0_12] : memref<136x128xf32, #tpu.memory_space<vmem>>, vector<1x4xf32>
    %cst_13 = arith.constant dense<0.000000e+00> : vector<16x8xf32>
    %14 = tpu.matmul %1, %0, %cst_13 {dimension_numbers = #tpu.dot_dimension_numbers<[1], [0], [0], [1], [0, 0, 1, 1], [], []>} : vector<16x16xf32>, vector<16x8xf32>, vector<16x8xf32> -> vector<16x8xf32>
    %cst_14 = arith.constant dense<0.000000e+00> : vector<16x32xf32>
    %15 = tpu.matmul %14, %6, %cst_14 {dimension_numbers = #tpu.dot_dimension_numbers<[1], [0], [0], [1], [0, 0, 1, 1], [], []>} : vector<16x8xf32>, vector<8x32xf32>, vector<16x32xf32> -> vector<16x32xf32>
    %16 = vector.broadcast %7 : vector<1x32xf32> to vector<16x32xf32>
    %17 = arith.addf %15, %16 : vector<16x32xf32>
    %cst_15 = arith.constant 0.000000e+00 : f32
    %18 = vector.broadcast %cst_15 : f32 to vector<16x32xf32>
    %19 = arith.maximumf %17, %18 : vector<16x32xf32>
    %cst_16 = arith.constant dense<0.000000e+00> : vector<16x32xf32>
    %20 = tpu.matmul %19, %8, %cst_16 {dimension_numbers = #tpu.dot_dimension_numbers<[1], [0], [0], [1], [0, 0, 1, 1], [], []>} : vector<16x32xf32>, vector<32x32xf32>, vector<16x32xf32> -> vector<16x32xf32>
    %cst_17 = arith.constant dense<0.000000e+00> : vector<16x32xf32>
    %21 = tpu.matmul %1, %20, %cst_17 {dimension_numbers = #tpu.dot_dimension_numbers<[1], [0], [0], [1], [0, 0, 1, 1], [], []>} : vector<16x16xf32>, vector<16x32xf32>, vector<16x32xf32> -> vector<16x32xf32>
    %22 = vector.broadcast %9 : vector<1x32xf32> to vector<16x32xf32>
    %23 = arith.addf %21, %22 : vector<16x32xf32>
    %cst_18 = arith.constant 0.000000e+00 : f32
    %24 = vector.broadcast %cst_18 : f32 to vector<16x32xf32>
    %25 = arith.maximumf %23, %24 : vector<16x32xf32>
    %cst_19 = arith.constant dense<0.000000e+00> : vector<16x32xf32>
    %26 = tpu.matmul %25, %10, %cst_19 {dimension_numbers = #tpu.dot_dimension_numbers<[1], [0], [0], [1], [0, 0, 1, 1], [], []>} : vector<16x32xf32>, vector<32x32xf32>, vector<16x32xf32> -> vector<16x32xf32>
    %cst_20 = arith.constant dense<0.000000e+00> : vector<1x32xf32>
    %27 = tpu.matmul %5, %26, %cst_20 {dimension_numbers = #tpu.dot_dimension_numbers<[1], [0], [0], [1], [0, 0, 1, 1], [], []>} : vector<1x16xf32>, vector<16x32xf32>, vector<1x32xf32> -> vector<1x32xf32>
    %28 = arith.addf %27, %11 : vector<1x32xf32>
    %cst_21 = arith.constant dense<0.000000e+00> : vector<1x4xf32>
    %29 = tpu.matmul %28, %12, %cst_21 {dimension_numbers = #tpu.dot_dimension_numbers<[1], [0], [0], [1], [0, 0, 1, 1], [], []>} : vector<1x32xf32>, vector<32x4xf32>, vector<1x4xf32> -> vector<1x4xf32>
    %30 = arith.addf %29, %13 : vector<1x4xf32>
    %cst_22 = arith.constant dense<0xFF800000> : vector<1xf32>
    %31 = vector.multi_reduction <maximumf>, %30, %cst_22 [1] : vector<1x4xf32> to vector<1xf32>
    %32 = vector.shape_cast %31 : vector<1xf32> to vector<1x1xf32>
    %33 = vector.broadcast %32 : vector<1x1xf32> to vector<1x4xf32>
    %34 = arith.subf %30, %33 : vector<1x4xf32>
    %35 = math.exp %34 : vector<1x4xf32>
    %cst_23 = arith.constant dense<0.000000e+00> : vector<1xf32>
    %36 = vector.multi_reduction <add>, %35, %cst_23 [1] : vector<1x4xf32> to vector<1xf32>
    %37 = vector.shape_cast %36 : vector<1xf32> to vector<1x1xf32>
    %38 = math.log %37 : vector<1x1xf32>
    %39 = vector.broadcast %38 : vector<1x1xf32> to vector<1x4xf32>
    %40 = arith.subf %34, %39 : vector<1x4xf32>
    %c0_24 = arith.constant 0 : index
    %c0_25 = arith.constant 0 : index
    %41 = vector.load %arg3[%c0_24, %c0_25] : memref<1x4xf32, #tpu.memory_space<vmem>>, vector<1x4xf32>
    tpu.vector_store %arg3[%c0_24, %c0_25], %40 {strides = array<i32>} : memref<1x4xf32, #tpu.memory_space<vmem>>, vector<1x4xf32>,
    return
  }
}

</mosaic_0001>

<bundles_post_ra>
// kernel: gcn_synthetic_graph_forward.1
= control target key start
LH: loop header
LB: loop body
LE: loop exit
PB: predicated region body
PF: predicated region fallthrough
CT: control target
= control target key end

     0   :  { %8 = vsyncpa [#allocation3], 0  ;;  %s430_s0 = inlined_call_operand.vmem [shape: f32[16,8], index: 0, kind: input, shape index: {}]   ;;  %s431_s1 = inlined_call_operand.vmem [shape: f32[16,16], index: 1, kind: input, shape index: {}]   ;;  %s432_s2 = inlined_call_operand.hbm [shape: f32[136,128], index: 2, kind: input, shape index: {}]   ;;  %s433_s3 = inlined_call_operand.hbm [shape: f32[1,4], index: 3, kind: output, shape index: {}]  }
   0x1   :  { %9 = vsyncpa [#allocation4], 0  ;;  %s18_s14 = sshll.u32 %s432_s2, 4  ;;  %s372_s15 = smov [#allocation2]   ;;  %s19_s14 = int_to_ptr.hbm [resolvable:$true] %s18_s14 }
   0x2   :  { %s20_s16 = sshll.u32 %s372_s15, 4  ;;  %s373_s17 = smov 128   ;;  %s21_s16 = int_to_ptr.vmem [resolvable:$true] %s20_s16 }
   0x3   :  { %s374_s18 = smov 8  }
   0x4   :  { %26 = dma.hbm_to_vmem [thread:$0]  %s19_s14, 2176, %s21_s16, [#allocation3], %s373_s17, %s373_s17, %s374_s18  }
   0x5   :  { %368 = dma.done.wait [#allocation3], 2176  }
   0x6   :  { %369 = vsyncadd [#allocation3], 4294965120  ;;  %v32_v0 = vld [vmem:[%s430_s0 + $0x8] sm:$0xff]  ;;  %v31_v1 = vld [vmem:[%s430_s0] sm:$0xff]  ;;  %vm35_vm0 = vcmask 130048   ;;  %vm100_vm1 = vcmask 64512  }
   0x7   :  { %90 = vmatpush.msra.mxu0 %v32_v0  ;;  %v33_v2 = vld [vmem:[%s431_s1] sm:$0xff]  ;;  %v34_v3 = vld [vmem:[%s431_s1 + $0x8] sm:$0xff]  ;;  %v57_v8 = vld [vmem:[#allocation2 + $0x18] sm:$0xff]  ;;  %vm132_vm2 = vcmask 261120   ;;  %v375_v34 = vmov 16.0   ;;  %vm263_vm4 = vcmask 24576  }
   0x8   :  { %v53_v4 = vld [vmem:[#allocation2] sm:$0xff]  ;;  %v56_v9 = vld [vmem:[#allocation2 + $0x10] sm:$0xff]  ;;  %v55_v10 = vld [vmem:[#allocation2 + $0x8] sm:$0xff]  ;;  %v36_v31 = vsel %vm35_vm0, %v33_v2, 0.0  ;;  %v37_v32 = vsel %vm35_vm0, %v34_v3, 0.0  ;;  %314 = vrcp.f32 %v375_v34  ;;  %s376_s0 = smov [#allocation5]  }
   0x9   :  { %91 = vmatpush.msra.mxu0 %v31_v1  ;;  %122 = vmatpush.msra.mxu1 %v53_v4  ;;  %v58_v5 = vld [vmem:[#allocation2 + $0x20] sm:$0xff]  ;;  %v312_v11 = vld [vmem:[#allocation2 + $0x68] ss:$0 sm:$0xff]  ;;  %v62_v21 = vld [vmem:[#allocation2 + $0x38] sm:$0xff]  ;;  %v38_v33 = vadd.f32 %v37_v32, %v36_v31  ;;  %s282_s1 = sshll.u32 %s376_s0, 4  ;;  %s284_s28 = sshll.u32 %s433_s3, 4  ;;  %s283_s1 = int_to_ptr.vmem [resolvable:$true] %s282_s1  ;;  %s285_s28 = int_to_ptr.hbm [resolvable:$true] %s284_s28 }
   0xa   :  { %294 = vmatmul.msk.f32.vlgmr.msra.gmra.mxu0 %vm35_vm0, %v33_v2  ;;  %306 = vmatpush.msra.mxu2 %v53_v4  ;;  %v63_v18 = vld [vmem:[#allocation2 + $0x40] sm:$0xff]  ;;  %v61_v22 = vld [vmem:[#allocation2 + $0x30] sm:$0xff]  ;;  %v60_v23 = vld [vmem:[#allocation2 + $0x28] sm:$0xff] }
   0xb   :  { %206 = vmatpush.msrb.mxu1 %v63_v18  ;;  %v313_v24 = vld [vmem:[#allocation2 + $0x70] ss:$0 sm:$0xff]  ;;  %v68_v35 = vld [vmem:[#allocation2 + $0x60] sm:$0xff]  ;;  %v67_v36 = vld [vmem:[#allocation2 + $0x58] sm:$0xff]  ;;  %v39_v37 = vrot.slane %v38_v33, 4 }
   0xc   :  { %151 = vmatpush.msrb.mxu2 %v58_v5  ;;  %v66_v52 = vld [vmem:[#allocation2 + $0x50] sm:$0xff]  ;;  %v65_v53 = vld [vmem:[#allocation2 + $0x48] sm:$0xff]  ;;  %v64_v54 = vld [vmem:[#allocation2 + $0x78] sm:$0x1] }
   0xd   :  { %207 = vmatpush.msrb.mxu1 %v62_v21  ;;  %v40_v39 = vadd.f32 %v39_v37, %v38_v33  ;;  %v69_v57 = vld [vmem:[#allocation2 + $0x80] sm:$0x1] }
   0xe   :  { %152 = vmatpush.msrb.mxu2 %v57_v8  ;;  %v315_v38 = vpop.eup %314 }
   0xf   :  { %208 = vmatpush.msrb.mxu1 %v61_v22  ;;  %v46_v40 = vmul.f32 16.0, %v315_v38  ;;  %v41_v41 = vrot.slane %v40_v39, 2  ;;  %vm50_vm3 = vweird.f32 %v315_v38 }
  0x10   :  { %153 = vmatpush.msrb.mxu2 %v56_v9 }
  0x11   :  { %209 = vmatpush.msrb.mxu1 %v60_v23  ;;  %v47_v42 = vsub.f32 1.0, %v46_v40  ;;  %v42_v43 = vadd.f32 %v41_v41, %v40_v39 }
  0x12   :  { %295 = vmatmul.msk.f32.gmra.mxu0 %vm35_vm0, %v34_v3  ;;  %154 = vmatpush.msrb.mxu2 %v55_v10 }
  0x13   :  { %v48_v44 = vmul.f32 %v315_v38, %v47_v42  ;;  %v43_v45 = vrot.slane %v42_v43, 1 }
  0x15   :  { %v49_v47 = vadd.f32 %v315_v38, %v48_v44  ;;  %v44_v48 = vadd.f32 %v43_v45, %v42_v43 }
  0x17   :  { %v51_v49 = vsel %vm50_vm3, %v315_v38, %v49_v47 }
  0x18   :  { %v52_v51 = vmul.f32 %v51_v49, %v44_v48 }
  0x87   :  { %v93_v6 = vpop.f32.mrf.mxu0 }
  0x88   :  { %296 = vmatmul.msk.f32.vlgmr.msra.gmra.mxu1 %vm100_vm1, %v93_v6 }
  0x8f   :  { %v96_v7 = vpop.f32.mrf.mxu0 }
  0x90   :  { %297 = vmatmul.msk.f32.vlgmr.msra.gmra.mxu2 %vm100_vm1, %v96_v7 }
 0x105   :  { %v124_v12 = vpop.f32.mrf.mxu1 }
 0x106   :  { %v125_v13 = vadd.f32 %v312_v11, %v124_v12 }
 0x108   :  { %v130_v14 = vmax.f32 %v125_v13, 0.0 }
 0x10a   :  { %298 = vmatmul.msk.f32.vlgmr.msrb.gmra.mxu2 %vm132_vm2, %v130_v14 }
 0x113   :  { %v127_v15 = vpop.f32.mrf.mxu2 }
 0x114   :  { %v128_v16 = vadd.f32 %v312_v11, %v127_v15 }
 0x116   :  { %v131_v17 = vmax.f32 %v128_v16, 0.0 }
 0x118   :  { %299 = vmatmul.msk.f32.gmra.mxu2 %vm132_vm2, %v131_v17 }
 0x18d   :  { %v156_v19 = vpop.f32.mrf.mxu2 }
 0x19b   :  { %v159_v20 = vpop.f32.mrf.mxu2 }
 0x19c   :  { %177 = vmatpush.msra.mxu3 %v159_v20 }
 0x19e   :  { %178 = vmatpush.msra.mxu3 %v156_v19 }
 0x19f   :  { %300 = vmatmul.msk.f32.vlgmr.msra.gmra.mxu3 %vm35_vm0, %v33_v2 }
 0x1a0   :  { %255 = vmatpush.msrb.mxu3 %v68_v35 }
 0x1a2   :  { %256 = vmatpush.msrb.mxu3 %v67_v36 }
 0x1a4   :  { %257 = vmatpush.msrb.mxu3 %v66_v52 }
 0x1a6   :  { %258 = vmatpush.msrb.mxu3 %v65_v53 }
 0x1a7   :  { %301 = vmatmul.msk.f32.gmra.mxu3 %vm35_vm0, %v34_v3 }
 0x222   :  { %v180_v25 = vpop.f32.mrf.mxu3 }
 0x223   :  { %v181_v26 = vadd.f32 %v313_v24, %v180_v25 }
 0x225   :  { %v186_v27 = vmax.f32 %v181_v26, 0.0 }
 0x227   :  { %302 = vmatmul.msk.f32.vlgmr.msrb.gmra.mxu1 %vm132_vm2, %v186_v27 }
 0x22a   :  { %v183_v28 = vpop.f32.mrf.mxu3 }
 0x22b   :  { %v184_v29 = vadd.f32 %v313_v24, %v183_v28 }
 0x22d   :  { %v187_v30 = vmax.f32 %v184_v29, 0.0 }
 0x22f   :  { %303 = vmatmul.msk.f32.gmra.mxu1 %vm132_vm2, %v187_v30 }
 0x2a4   :  { %v211_v46 = vpop.f32.mrf.mxu1 }
 0x2ac   :  { %v214_v50 = vpop.f32.mrf.mxu1 }
 0x2ad   :  { %234 = vmatpush.msrb.mxu0 %v214_v50 }
 0x2af   :  { %235 = vmatpush.msrb.mxu0 %v211_v46 }
 0x2b0   :  { %304 = vmatmul.msk.f32.vlgmr.msrb.gmra.mxu0 %vm35_vm0, %v52_v51 }
 0x32d   :  { %v237_v55 = vpop.f32.mrf.mxu0 }
 0x32e   :  { %v238_v56 = vadd.f32 %v237_v55, %v64_v54 }
 0x330   :  { %305 = vmatmul.msk.f32.vlgmr.msrb.gmra.mxu3 %vm132_vm2, %v238_v56 }
 0x3b3   :  { %v260_v58 = vpop.f32.mrf.mxu3 }
 0x3b4   :  { %v261_v59 = vadd.f32 %v260_v58, %v69_v57 }
 0x3b6   :  { %v264_v60 = vsel %vm263_vm4, %v261_v59, -inf }
 0x3b7   :  { %265 = vmax.xlane.f32.xlu0 %v264_v60 }
 0x42a   :  { %v266_v61 = vpop.xlane.xlu0 %265 }
 0x42b   :  { %v267_v62 = vsub.f32 %v261_v59, %v266_v61 }
 0x42d   :  { %v268_v63 = vmul.f32 1.442695, %v267_v62 }
 0x42f   :  { %316 = vpow2.f32 %v268_v63 }
 0x435   :  { %v317_v0 = vpop.eup %316 }
 0x436   :  { %v270_v1 = vsel %vm263_vm4, %v317_v0, 0.0 }
 0x437   :  { %271 = vadd.xlane.f32.xlu0 %v270_v1 }
 0x4aa   :  { %v272_v2 = vpop.xlane.xlu0 %271 }
 0x4ab   :  { %318 = vlog2.f32 %v272_v2 }
 0x4b1   :  { %v319_v3 = vpop.eup %318 }
 0x4b2   :  { %v274_v4 = vmul.f32 0.6931472, %v319_v3 }
 0x4b4   :  { %v275_v5 = vsub.f32 %v267_v62, %v274_v4 }
 0x4b6   :  { %276 = vst.msk [vmem:[#allocation5] sm:$0x1] %vm263_vm4, %v275_v5 }
 0x4b7   :  { %287 = dma.vmem_to_hbm [thread:$0]  %s283_s1, 16, %s285_s28, [#allocation4]  }
 0x4b8   :  { %370 = dma.done.wait [#allocation4], 16  }
 0x4b9   :  { %371 = vsyncadd [#allocation4], 4294967280 }
 0x4ba   :  { %292 = vsyncpa [#allocation3], 1 }
 0x4bb   :  { %293 = vsyncpa [#allocation4], 1 }

</bundles_post_ra>
